<compile_context>
chip_gen: v7x
topology: tpu7x:2x2x1
jax: 0.10.0
libtpu: 0.0.40
codegen_flags: <defaults>
</compile_context>

<pallas_src>
import numpy as np
import jax
import jax.numpy as jnp
from jax import lax
from jax.experimental import pallas as pl
from jax.experimental.pallas import tpu as pltpu

# Constants from the PyTorch script
ALPHA = np.float32(np.exp(-1.0 / 16.0))
BETA = np.float32(1.0 - 1.0 / 16.0)
THRESHOLD = np.float32(1.0)

_SMEM = pl.BlockSpec(memory_space=pltpu.MemorySpace.SMEM)
_VMEM = pl.BlockSpec(memory_space=pltpu.MemorySpace.VMEM)


# --------------------------------------------------------------------------
# Single snn.Synaptic step (exactly the module's forward), lane-dense (1, B)
# --------------------------------------------------------------------------
def _synaptic_step_kernel(w_ref, x_ref, syn_ref, mem_ref,
                          spk_ref, syn_out_ref, mem_out_ref):
    w = w_ref[0]                                   # scalar weight from SMEM
    curr = x_ref[...] * w                          # K = F = 1 -> VPU multiply

    # reset computed from the *previous* membrane (snnTorch Synaptic, subtract)
    reset = jnp.where(mem_ref[...] > THRESHOLD, 1.0, 0.0).astype(jnp.float32)
    syn_new = ALPHA * syn_ref[...] + curr
    mem_new = BETA * mem_ref[...] + syn_new - reset * THRESHOLD

    spk_ref[...] = jnp.where(mem_new > THRESHOLD, 1.0, 0.0).astype(jnp.float32)
    syn_out_ref[...] = syn_new
    mem_out_ref[...] = mem_new


def net_forward(x, weight, syn, mem):
    """x: (B, 1); weight: any shape with one element (module stores (1,1));
    syn/mem: (1,1) or (B,1).  Returns (spk, syn_new, mem_new), each (B, 1)."""
    x = jnp.asarray(x, jnp.float32)
    B, K = x.shape
    assert K == 1
    w = jnp.asarray(weight, jnp.float32).reshape(-1)[:1]          # (1,) SMEM scalar

    # State may be the module's (1,1) initial state or per-element (B,1);
    # broadcast to the lane-dense (1, B) row the kernel works on.
    syn_row = jnp.broadcast_to(jnp.asarray(syn, jnp.float32).reshape(1, -1), (1, B))
    mem_row = jnp.broadcast_to(jnp.asarray(mem, jnp.float32).reshape(1, -1), (1, B))
    x_row = x.reshape(1, B)

    spk, syn_new, mem_new = pl.pallas_call(
        _synaptic_step_kernel,
        out_shape=(
            jax.ShapeDtypeStruct((1, B), jnp.float32),
            jax.ShapeDtypeStruct((1, B), jnp.float32),
            jax.ShapeDtypeStruct((1, B), jnp.float32),
        ),
        in_specs=[_SMEM, _VMEM, _VMEM, _VMEM],
        out_specs=(_VMEM, _VMEM, _VMEM),
    )(w, x_row, syn_row, mem_row)

    return spk.reshape(B, 1), syn_new.reshape(B, 1), mem_new.reshape(B, 1)


# --------------------------------------------------------------------------
# Fused T-step SNN simulation: ONE pallas_call, NO grid.
# x_seq sits in VMEM, time is an unrolled in-kernel loop, state is carried
# in vregs, final state written once after the loop.
# --------------------------------------------------------------------------
def _synaptic_seq_kernel(w_ref, syn0_ref, mem0_ref, x_ref,
                         spk_ref, syn_out_ref, mem_out_ref):
    T, B = x_ref.shape                              # static
    w = w_ref[0]                                    # hoisted scalar weight

    syn_init = jnp.full((1, B), syn0_ref[0], jnp.float32)
    mem_init = jnp.full((1, B), mem0_ref[0], jnp.float32)

    def body(t, carry):
        syn, mem = carry
        x_t = x_ref[pl.ds(t, 1), :]                 # (1, B)
        curr = x_t * w                              # VPU multiply (no MXU)
        reset = jnp.where(mem > THRESHOLD, 1.0, 0.0).astype(jnp.float32)
        syn_new = ALPHA * syn + curr
        mem_new = BETA * mem + syn_new - reset * THRESHOLD
        spk_ref[pl.ds(t, 1), :] = jnp.where(
            mem_new > THRESHOLD, 1.0, 0.0).astype(jnp.float32)
        return syn_new, mem_new

    syn_f, mem_f = lax.fori_loop(0, T, body, (syn_init, mem_init), unroll=True)

    # Final state written exactly once.
    syn_out_ref[...] = syn_f
    mem_out_ref[...] = mem_f


def net_forward_seq(x_seq, weight, syn, mem):
    """x_seq: (T, B, 1).  Runs T Synaptic steps in ONE kernel launch.
    Returns (spk_seq (T,B,1), syn_final (B,1), mem_final (B,1))."""
    x_seq = jnp.asarray(x_seq, jnp.float32)
    T, B, K = x_seq.shape
    assert K == 1
    w = jnp.asarray(weight, jnp.float32).reshape(-1)[:1]          # (1,)
    syn0 = jnp.asarray(syn, jnp.float32).reshape(-1)[:1]          # (1,) initial scalar
    mem0 = jnp.asarray(mem, jnp.float32).reshape(-1)[:1]          # (1,)
    x2d = x_seq.reshape(T, B)                                     # lane-dense

    spk, syn_f, mem_f = pl.pallas_call(
        _synaptic_seq_kernel,
        out_shape=(
            jax.ShapeDtypeStruct((T, B), jnp.float32),
            jax.ShapeDtypeStruct((1, B), jnp.float32),
            jax.ShapeDtypeStruct((1, B), jnp.float32),
        ),
        in_specs=[_SMEM, _SMEM, _SMEM, _VMEM],
        out_specs=(_VMEM, _VMEM, _VMEM),
    )(w, syn0, mem0, x2d)

    return spk.reshape(T, B, 1), syn_f.reshape(B, 1), mem_f.reshape(B, 1)


# --------------------------------------------------------------------------
if __name__ == "__main__":
    # Shapes implied by the script: N = 1 (input features), out_sz = 1 (readout)
    N = 1
    out_sz = 1
    B = 2
    T = 8
    W_VAL = np.float32(0.05)

    key = jax.random.PRNGKey(0)
    k1, k2 = jax.random.split(key)
    x = jax.random.normal(k1, (B, N), dtype=jnp.float32)
    # Larger drive for the sequence so the threshold/reset path is exercised.
    x_seq = jax.random.normal(k2, (T, B, N), dtype=jnp.float32) * 40.0

    weight = jnp.ones((N, out_sz), jnp.float32) * W_VAL          # module's override
    syn0 = jnp.zeros((1, 1), jnp.float32)
    mem0 = jnp.zeros((1, 1), jnp.float32)

    # Pure-JAX reference of one Synaptic step (per-element state allowed).
    def ref_step(x_t, syn_p, mem_p):
        curr = x_t * W_VAL                           # 1x1 linear == scalar multiply
        reset = (mem_p > THRESHOLD).astype(jnp.float32)
        syn_n = ALPHA * syn_p + curr
        mem_n = BETA * mem_p + syn_n - reset * THRESHOLD
        spk_n = (mem_n > THRESHOLD).astype(jnp.float32)
        return spk_n, syn_n, mem_n

    # --- single step (the module's forward) ---
    spk, syn1, mem1 = net_forward(x, weight, syn0, mem0)
    jax.block_until_ready((spk, syn1, mem1))

    spk_r, syn_r, mem_r = ref_step(x, syn0, mem0)
    np.testing.assert_allclose(np.asarray(spk), np.asarray(spk_r), rtol=1e-5, atol=1e-5)
    np.testing.assert_allclose(np.asarray(syn1), np.asarray(syn_r), rtol=1e-5, atol=1e-5)
    np.testing.assert_allclose(np.asarray(mem1), np.asarray(mem_r), rtol=1e-5, atol=1e-5)

    # --- fused T-step sequence (one launch, no grid) ---
    spk_seq, syn_T, mem_T = net_forward_seq(x_seq, weight, syn0, mem0)
    jax.block_until_ready((spk_seq, syn_T, mem_T))

    syn_c = jnp.zeros((B, out_sz), jnp.float32) + syn0
    mem_c = jnp.zeros((B, out_sz), jnp.float32) + mem0
    spk_list = []
    for t in range(T):
        s_t, syn_c, mem_c = ref_step(x_seq[t], syn_c, mem_c)
        spk_list.append(s_t)
    spk_seq_r = jnp.stack(spk_list, axis=0)

    np.testing.assert_allclose(np.asarray(spk_seq), np.asarray(spk_seq_r),
                               rtol=1e-5, atol=1e-5)
    np.testing.assert_allclose(np.asarray(syn_T), np.asarray(syn_c),
                               rtol=1e-5, atol=1e-5)
    np.testing.assert_allclose(np.asarray(mem_T), np.asarray(mem_c),
                               rtol=1e-5, atol=1e-5)

    print("KERNEL_OK")
</pallas_src>

<mosaic_0001>
module attributes {stable_mosaic.version = 11 : i64} {
  func.func @_synaptic_step_kernel(%arg0: memref<1xf32, #tpu.memory_space<smem>>, %arg1: memref<1x2xf32, #tpu.memory_space<vmem>>, %arg2: memref<1x2xf32, #tpu.memory_space<vmem>>, %arg3: memref<1x2xf32, #tpu.memory_space<vmem>>, %arg4: memref<1x2xf32, #tpu.memory_space<vmem>>, %arg5: memref<1x2xf32, #tpu.memory_space<vmem>>, %arg6: memref<1x2xf32, #tpu.memory_space<vmem>>) attributes {dimension_semantics = [], scalar_prefetch = 0 : i64, scratch_operands = 0 : i64, tpu.core_type = #tpu.core_type<tc>} {
    %c0 = arith.constant 0 : index
    %0 = memref.load %arg0[%c0] : memref<1xf32, #tpu.memory_space<smem>>
    %c0_0 = arith.constant 0 : index
    %c0_1 = arith.constant 0 : index
    %1 = vector.load %arg1[%c0_0, %c0_1] : memref<1x2xf32, #tpu.memory_space<vmem>>, vector<1x2xf32>
    %2 = vector.broadcast %0 : f32 to vector<1x2xf32>
    %3 = arith.mulf %1, %2 : vector<1x2xf32>
    %c0_2 = arith.constant 0 : index
    %c0_3 = arith.constant 0 : index
    %4 = vector.load %arg3[%c0_2, %c0_3] : memref<1x2xf32, #tpu.memory_space<vmem>>, vector<1x2xf32>
    %cst = arith.constant 1.000000e+00 : f32
    %5 = vector.broadcast %cst : f32 to vector<1x2xf32>
    %6 = arith.cmpf ogt, %4, %5 : vector<1x2xf32>
    %cst_4 = arith.constant 1.000000e+00 : f32
    %cst_5 = arith.constant 0.000000e+00 : f32
    %7 = vector.broadcast %cst_4 : f32 to vector<1x2xf32>
    %8 = vector.broadcast %cst_5 : f32 to vector<1x2xf32>
    %9 = arith.select %6, %7, %8 : vector<1x2xi1>, vector<1x2xf32>
    %c0_6 = arith.constant 0 : index
    %c0_7 = arith.constant 0 : index
    %10 = vector.load %arg2[%c0_6, %c0_7] : memref<1x2xf32, #tpu.memory_space<vmem>>, vector<1x2xf32>
    %cst_8 = arith.constant 0.93941307 : f32
    %11 = vector.broadcast %cst_8 : f32 to vector<1x2xf32>
    %12 = arith.mulf %11, %10 : vector<1x2xf32>
    %13 = arith.addf %12, %3 : vector<1x2xf32>
    %c0_9 = arith.constant 0 : index
    %c0_10 = arith.constant 0 : index
    %14 = vector.load %arg3[%c0_9, %c0_10] : memref<1x2xf32, #tpu.memory_space<vmem>>, vector<1x2xf32>
    %cst_11 = arith.constant 9.375000e-01 : f32
    %15 = vector.broadcast %cst_11 : f32 to vector<1x2xf32>
    %16 = arith.mulf %15, %14 : vector<1x2xf32>
    %17 = arith.addf %16, %13 : vector<1x2xf32>
    %cst_12 = arith.constant 1.000000e+00 : f32
    %18 = vector.broadcast %cst_12 : f32 to vector<1x2xf32>
    %19 = arith.mulf %9, %18 : vector<1x2xf32>
    %20 = arith.subf %17, %19 : vector<1x2xf32>
    %cst_13 = arith.constant 1.000000e+00 : f32
    %21 = vector.broadcast %cst_13 : f32 to vector<1x2xf32>
    %22 = arith.cmpf ogt, %20, %21 : vector<1x2xf32>
    %cst_14 = arith.constant 1.000000e+00 : f32
    %cst_15 = arith.constant 0.000000e+00 : f32
    %23 = vector.broadcast %cst_14 : f32 to vector<1x2xf32>
    %24 = vector.broadcast %cst_15 : f32 to vector<1x2xf32>
    %25 = arith.select %22, %23, %24 : vector<1x2xi1>, vector<1x2xf32>
    %c0_16 = arith.constant 0 : index
    %c0_17 = arith.constant 0 : index
    %26 = vector.load %arg4[%c0_16, %c0_17] : memref<1x2xf32, #tpu.memory_space<vmem>>, vector<1x2xf32>
    tpu.vector_store %arg4[%c0_16, %c0_17], %25 {strides = array<i32>} : memref<1x2xf32, #tpu.memory_space<vmem>>, vector<1x2xf32>,
    %c0_18 = arith.constant 0 : index
    %c0_19 = arith.constant 0 : index
    %27 = vector.load %arg5[%c0_18, %c0_19] : memref<1x2xf32, #tpu.memory_space<vmem>>, vector<1x2xf32>
    tpu.vector_store %arg5[%c0_18, %c0_19], %13 {strides = array<i32>} : memref<1x2xf32, #tpu.memory_space<vmem>>, vector<1x2xf32>,
    %c0_20 = arith.constant 0 : index
    %c0_21 = arith.constant 0 : index
    %28 = vector.load %arg6[%c0_20, %c0_21] : memref<1x2xf32, #tpu.memory_space<vmem>>, vector<1x2xf32>
    tpu.vector_store %arg6[%c0_20, %c0_21], %20 {strides = array<i32>} : memref<1x2xf32, #tpu.memory_space<vmem>>, vector<1x2xf32>,
    return
  }
}

</mosaic_0001>

<bundles_post_ra>
// kernel: tpu_custom_call.1
= control target key start
LH: loop header
LB: loop body
LE: loop exit
PB: predicated region body
PF: predicated region fallthrough
CT: control target
= control target key end

     0   :  { %13 = vsyncpa [#allocation4], 0  ;;  %s255_s0 = inlined_call_operand.<no memory space> [shape: f32[1], index: 0, kind: input, shape index: {}]   ;;  %s256_s1 = inlined_call_operand.vmem [shape: f32[1,2], index: 1, kind: input, shape index: {}]   ;;  %s257_s2 = inlined_call_operand.vmem [shape: f32[1,2], index: 2, kind: input, shape index: {}]   ;;  %s258_s3 = inlined_call_operand.vmem [shape: f32[1,2], index: 3, kind: input, shape index: {}]   ;;  %s259_s4 = inlined_call_operand.hbm [shape: f32[1,2], index: 4, kind: output, shape index: {0}]   ;;  %s260_s5 = inlined_call_operand.hbm [shape: f32[1,2], index: 5, kind: output, shape index: {1}]   ;;  %s261_s6 = inlined_call_operand.hbm [shape: f32[1,2], index: 6, kind: output, shape index: {2}]  }
   0x1   :  { %v24_v0 = vld [vmem:[%s256_s1] sm:$0x1]  ;;  %v25_v1 = vstv %s255_s0 }
   0x2   :  { %v27_v2 = vld [vmem:[%s258_s3] sm:$0x1]  ;;  %v26_v4 = vmul.f32 %v25_v1, %v24_v0 }
   0x3   :  { %v30_v3 = vld [vmem:[%s257_s2] sm:$0x1]  ;;  %v33_v6 = vmul.f32 0.9375, %v27_v2 }
   0x4   :  { %v31_v5 = vmul.f32 0.9394131, %v30_v3 }
   0x5   :  { %14 = vsyncpa [#allocation6], 0  ;;  %vm38_vm0 = vcmask 8192   ;;  %vm28_vm1 = vcmp.gt.f32.partialorder %v27_v2, 1.0  ;;  %s157_s1 = smov [#allocation5]   ;;  %v158_v8 = vmov 0.0  }
   0x6   :  { %v32_v7 = vadd.f32 %v31_v5, %v26_v4  ;;  %s58_s29 = sshll.u32 %s157_s1, 4  ;;  %v29_v9 = vsel %vm28_vm1, 1.0, %v158_v8  ;;  %s159_s0 = smov [#allocation3]   ;;  %s59_s29 = int_to_ptr.vmem [resolvable:$true] %s58_s29 }
   0x7   :  { %s48_s3 = sshll.u32 %s159_s0, 4  ;;  %s87_s30 = scalar_lea.vmem %s59_s29, 16  ;;  %s222_s3 = int_to_ptr.vmem [resolvable:$true] %s48_s3 }
   0x8   :  { %v34_v10 = vadd.f32 %v33_v6, %v32_v7  ;;  %40 = vst.msk [vmem:[#allocation5] sm:$0x1] %vm38_vm0, %v32_v7  ;;  %p88_p0 = scmp.ne.s32.totalorder %s59_s29, %s87_s30  ;;  %s91_s2 = scalar_lea.vmem %s59_s29, 32 }
   0x9   :  { %p92_p1 = scmp.lt.s32.totalorder %s59_s29, %s59_s29  ;;  %p93_p2 = scmp.lt.s32.totalorder %s91_s2, %s87_s30 }
   0xb   :  { %p94_p3 = por %p93_p2, %p92_p1 }
   0xd   :  { %p95_p4 = pnand %p94_p3, %p88_p0 }
   0xf   :  { %98 = shalt.err (!%p95_p4)
}
  0x10   :  { %s99_s9 = scalar_lea.hbm %s260_s5, 16 }
  0x11   :  { %p100_p5 = scmp.ne.s32.totalorder %s260_s5, %s99_s9  ;;  %p103_p6 = scmp.lt.u32.totalorder %s99_s9, %s260_s5 }
  0x13   :  { %p105_p7 = pnand %p103_p6, %p100_p5 }
  0x15   :  { %108 = shalt.err (!%p105_p7)
}
  0x16   :  { %61 = dma.vmem_to_hbm [thread:$0]  %s59_s29, 16, %s260_s5, [#allocation6]   ;;  %v35_v11 = vsub.f32 %v34_v10, %v29_v9 }
  0x17   :  { %s160_s16 = smov [#allocation7]  }
  0x18   :  { %s68_s17 = sshll.u32 %s160_s16, 4  ;;  %vm36_vm2 = vcmp.gt.f32.partialorder %v35_v11, 1.0  ;;  %41 = vst.msk [vmem:[#allocation7] sm:$0x1] %vm38_vm0, %v35_v11  ;;  %s69_s17 = int_to_ptr.vmem [resolvable:$true] %s68_s17 }
  0x19   :  { %v37_v12 = vsel %vm36_vm2, 1.0, %v158_v8  ;;  %s109_s18 = scalar_lea.vmem %s69_s17, 16  ;;  %s113_s19 = scalar_lea.vmem %s69_s17, 32 }
  0x1a   :  { %p110_p8 = scmp.ne.s32.totalorder %s69_s17, %s109_s18  ;;  %p114_p9 = scmp.lt.s32.totalorder %s69_s17, %s69_s17 }
  0x1b   :  { %p115_p10 = scmp.lt.s32.totalorder %s113_s19, %s109_s18 }
  0x1d   :  { %p116_p11 = por %p115_p10, %p114_p9 }
  0x1f   :  { %p117_p12 = pnand %p116_p11, %p110_p8 }
  0x21   :  { %120 = shalt.err (!%p117_p12)
}
  0x22   :  { %s121_s21 = scalar_lea.hbm %s261_s6, 16 }
  0x23   :  { %p122_p13 = scmp.ne.s32.totalorder %s261_s6, %s121_s21  ;;  %p125_p0 = scmp.lt.u32.totalorder %s121_s21, %s261_s6 }
  0x25   :  { %p127_p1 = pnand %p125_p0, %p122_p13 }
  0x27   :  { %130 = shalt.err (!%p127_p1)
}
  0x28   :  { %71 = dma.vmem_to_hbm [thread:$0]  %s69_s17, 16, %s261_s6, [#allocation6]   ;;  %39 = vst.msk [vmem:[#allocation3] sm:$0x1] %vm38_vm0, %v37_v12 }
  0x29   :  { %s131_s28 = scalar_lea.vmem %s222_s3, 16  ;;  %s135_s1 = scalar_lea.vmem %s222_s3, 32 }
  0x2a   :  { %p132_p2 = scmp.ne.s32.totalorder %s222_s3, %s131_s28  ;;  %p136_p3 = scmp.lt.s32.totalorder %s222_s3, %s222_s3 }
  0x2b   :  { %p137_p4 = scmp.lt.s32.totalorder %s135_s1, %s131_s28 }
  0x2d   :  { %p138_p5 = por %p137_p4, %p136_p3 }
  0x2f   :  { %p139_p6 = pnand %p138_p5, %p132_p2 }
  0x31   :  { %142 = shalt.err (!%p139_p6)
}
  0x32   :  { %s143_s30 = scalar_lea.hbm %s259_s4, 16 }
  0x33   :  { %p144_p7 = scmp.ne.s32.totalorder %s259_s4, %s143_s30  ;;  %p147_p8 = scmp.lt.u32.totalorder %s143_s30, %s259_s4 }
  0x35   :  { %p149_p9 = pnand %p147_p8, %p144_p7 }
  0x37   :  { %152 = shalt.err (!%p149_p9)
}
  0x38   :  { %51 = dma.vmem_to_hbm [thread:$0]  %s222_s3, 16, %s259_s4, [#allocation4]  }
  0x39   :  { %153 = dma.done.wait [#allocation4], 16  }
  0x3a   :  { %154 = vsyncadd [#allocation4], 4294967280 }
  0x3b   :  { %155 = dma.done.wait [#allocation6], 32  }
  0x3c   :  { %156 = vsyncadd [#allocation6], 4294967264 }
  0x3d   :  { %81 = vsyncpa [#allocation4], 1 }
  0x3e   :  { %82 = vsyncpa [#allocation6], 1 }

</bundles_post_ra>
